<compile_context>
chip_gen: v7x
topology: tpu7x:2x2x1
jax: 0.10.0
libtpu: 0.0.40
codegen_flags: <defaults>
</compile_context>

<pallas_src>
import math
import functools

import jax
import jax.numpy as jnp
from jax import lax
from jax.experimental import pallas as pl
from jax.experimental.pallas import tpu as pltpu


# ----------------------------- hyperbolic helpers ----------------------------
def _beta(a, b):
    return math.exp(math.lgamma(a) + math.lgamma(b) - math.lgamma(a + b))


def _artanh(x):
    x = jnp.clip(x, -1.0 + 1e-6, 1.0 - 1e-6)
    return 0.5 * jnp.log((1.0 + x) / (1.0 - x))


def _logmap0(x):
    sq = jnp.maximum(jnp.sum(x * x, axis=-1, keepdims=True), 1e-24)
    inv_norm = lax.rsqrt(sq)
    norm = sq * inv_norm
    return x * (_artanh(norm) * inv_norm)


def _expmap0(u):
    sq = jnp.maximum(jnp.sum(u * u, axis=-1, keepdims=True), 1e-24)
    inv_norm = lax.rsqrt(sq)
    norm = sq * inv_norm
    return u * (jnp.tanh(norm) * inv_norm)


# --------------------------------- kernel ------------------------------------
def make_fused_kernel(num_heads, head_dim, score_scale, compute_dtype):
    """One fused kernel per batch element: QKV proj + attention + out proj.

    Refs:
      x_ref      : (1, S, D)   input points on the Poincare ball (f32)
      wqkv_ref   : (D, 3D)     fused q/k/v weights  (compute_dtype)
      bqkv_ref   : (1, 3D)     fused q/k/v bias     (f32)
      wo_ref     : (D, D)      out-proj weights     (compute_dtype)
      bo_ref     : (1, D)      out-proj bias        (f32)
      out_ref    : (1, S, D)   output points on the ball (f32)
      concat_ref : (S, D)      VMEM scratch: beta-concat tangent (f32)
    """
    D = num_heads * head_dim

    def kernel(x_ref, wqkv_ref, bqkv_ref, wo_ref, bo_ref, out_ref, concat_ref):
        x = x_ref[0]                       # (S, D) points on the ball
        t = _logmap0(x)                    # shared tangent for q/k/v (f32)

        # Fused QKV PoincareLinear in tangent space.  PoincareLinear ->
        # beta-split -> logmap0 collapses to a pure scale of the projected
        # tangent (logmap0(expmap0(u)) == u away from the artanh clip); the
        # q/k scale is folded into `score_scale`, the v scale cancels with
        # the beta-concat scale.
        y = (jnp.dot(t.astype(compute_dtype), wqkv_ref[...],
                     preferred_element_type=jnp.float32)
             + bqkv_ref[...])              # (S, 3D), f32 accumulation

        # Head-major (H, S, hd) operands built by leading-axis stacking of
        # static lane slices, so both attention contractions run as a single
        # head-batched MXU stream instead of H micro-matmuls.
        def heads(base):
            return jnp.stack(
                [y[:, base + h * head_dim: base + (h + 1) * head_dim]
                 for h in range(num_heads)],
                axis=0).astype(compute_dtype)

        q3, k3, v3 = heads(0), heads(D), heads(2 * D)

        # score_scale = s_split^2 / sqrt(hd); head-batched q @ k^T.
        scores = jnp.einsum('hqd,hkd->hqk', q3, k3,
                            preferred_element_type=jnp.float32) * score_scale
        scores = scores - jnp.max(scores, axis=-1, keepdims=True)
        p = jnp.exp(scores)
        attn = p * pl.reciprocal(jnp.sum(p, axis=-1, keepdims=True),
                                 approx=True)          # EUP slot, ~free

        # Head-batched attn @ v.  beta-split scale on v cancels exactly with
        # the beta-concat scale and the expmap0/logmap0 round-trip cancels, so
        # o3 already IS the per-head concat tangent.
        o3 = jnp.einsum('hqk,hkd->hqd', attn.astype(compute_dtype), v3,
                        preferred_element_type=jnp.float32)     # (H, S, hd)

        # beta-concat into a lane-dense (S, D) VMEM slab ...
        for h in range(num_heads):
            concat_ref[:, pl.ds(h * head_dim, head_dim)] = o3[h]

        # ... then ONE out-projection matmul with contraction dim D.
        out_t = (jnp.dot(concat_ref[...].astype(compute_dtype), wo_ref[...],
                         preferred_element_type=jnp.float32)
                 + bo_ref[...])
        out_ref[0] = _expmap0(out_t)       # lane-dense (S, D) store

    return kernel


# -------------------------------- wrapper ------------------------------------
def timed_poincare_mha(x, params, num_heads, *, compute_dtype=jnp.bfloat16):
    """Forward pass of TimedPoincareMultiheadAttention (regular attention path)."""
    B, S, D = x.shape
    hd = D // num_heads
    s_split = _beta(hd / 2.0, 0.5) / _beta(D / 2.0, 0.5)
    score_scale = (s_split * s_split) / math.sqrt(hd)

    # Fuse the three projections into one (D, 3D) matmul.  Weights travel to
    # the MXU in compute_dtype (bf16 in production); biases stay f32 since
    # they are added to the f32 accumulator.
    wqkv = jnp.concatenate(
        [params["q_w"], params["k_w"], params["v_w"]], axis=1).astype(compute_dtype)
    bqkv = jnp.concatenate(
        [params["q_b"], params["k_b"], params["v_b"]], axis=1).astype(jnp.float32)
    wo = params["o_w"].astype(compute_dtype)
    bo = params["o_b"].astype(jnp.float32)

    w_bytes = jnp.dtype(compute_dtype).itemsize
    flops = B * (2 * S * D * 3 * D                 # fused QKV projection
                 + 4 * num_heads * S * S * hd      # scores + attn@v
                 + 2 * S * D * D)                  # out projection
    transcendentals = B * (4 * S + num_heads * S * S + num_heads * S)
    bytes_accessed = (2 * B * S * D * 4            # x in, out
                      + 4 * D * D * w_bytes        # wqkv + wo
                      + 4 * D * 4)                 # biases

    kernel = make_fused_kernel(num_heads, hd, score_scale, compute_dtype)

    return pl.pallas_call(
        kernel,
        out_shape=jax.ShapeDtypeStruct((B, S, D), jnp.float32),
        grid=(B,),
        in_specs=[
            pl.BlockSpec((1, S, D), lambda b: (b, 0, 0)),   # x (per batch)
            # Grid-invariant weights.  TODO(synk): at production D single-buffer
            # these (pipeline_mode=pl.Buffered(1) or pl.ANY + one-shot DMA) so
            # they are not double-buffered in VMEM (critical on v7x's 64 MiB).
            pl.BlockSpec((D, 3 * D), lambda b: (0, 0)),      # fused qkv W
            pl.BlockSpec((1, 3 * D), lambda b: (0, 0)),      # fused qkv b
            pl.BlockSpec((D, D), lambda b: (0, 0)),          # out W
            pl.BlockSpec((1, D), lambda b: (0, 0)),          # out b
        ],
        out_specs=pl.BlockSpec((1, S, D), lambda b: (b, 0, 0)),
        scratch_shapes=[pltpu.VMEM((S, D), jnp.float32)],    # concat tangent
        compiler_params=pltpu.CompilerParams(
            dimension_semantics=("parallel",),   # B even -> both v7x TCs busy
            vmem_limit_bytes=32 * 1024 * 1024),
        cost_estimate=pl.CostEstimate(
            flops=int(flops),
            transcendentals=int(transcendentals),
            bytes_accessed=int(bytes_accessed)),
    )(x, wqkv, bqkv, wo, bo)


# ---------------------------- pure-jnp reference ------------------------------
def reference_mha(x, params, num_heads):
    """Direct transcription of the module math (all logmap0/expmap0 round-trips)."""
    B, S, D = x.shape
    hd = D // num_heads
    s_split = _beta(hd / 2.0, 0.5) / _beta(D / 2.0, 0.5)
    s_concat = _beta(D / 2.0, 0.5) / _beta(hd / 2.0, 0.5)

    def plinear(z, w, b):
        return _expmap0(_logmap0(z) @ w + b)

    q = plinear(x, params["q_w"], params["q_b"])
    k = plinear(x, params["k_w"], params["k_b"])
    v = plinear(x, params["v_w"], params["v_b"])

    def split_heads(z):
        t = _logmap0(z)                                   # (B, S, D)
        t = t.reshape(B, S, num_heads, hd).transpose(0, 2, 1, 3)
        return _expmap0(t * s_split)                      # (B, H, S, hd) on ball

    qh, kh, vh = split_heads(q), split_heads(k), split_heads(v)
    scores = jnp.einsum("bhqd,bhkd->bhqk", _logmap0(qh), _logmap0(kh)) / math.sqrt(hd)
    attn = jax.nn.softmax(scores, axis=-1)
    o = _expmap0(jnp.einsum("bhqk,bhkd->bhqd", attn, _logmap0(vh)))
    concat_t = (_logmap0(o) * s_concat).transpose(0, 2, 1, 3).reshape(B, S, D)
    out = plinear(_expmap0(concat_t), params["o_w"], params["o_b"])
    return out


# ----------------------------------- main -------------------------------------
if __name__ == "__main__":
    B, S, D, H = 2, 8, 32, 4   # batch, seq, model_dim, num_heads  (head_dim = 8)

    key = jax.random.PRNGKey(0)
    kx, kq, kk, kv, ko, kbq, kbk, kbv, kbo = jax.random.split(key, 9)

    # input points on the Poincare ball
    x = _expmap0(0.1 * jax.random.normal(kx, (B, S, D), dtype=jnp.float32))

    scale = 1.0 / math.sqrt(D)
    params = {
        "q_w": jax.random.uniform(kq, (D, D), jnp.float32, -scale, scale),
        "k_w": jax.random.uniform(kk, (D, D), jnp.float32, -scale, scale),
        "v_w": jax.random.uniform(kv, (D, D), jnp.float32, -scale, scale),
        "o_w": jax.random.uniform(ko, (D, D), jnp.float32, -scale, scale),
        "q_b": jax.random.uniform(kbq, (1, D), jnp.float32, -scale, scale),
        "k_b": jax.random.uniform(kbk, (1, D), jnp.float32, -scale, scale),
        "v_b": jax.random.uniform(kbv, (1, D), jnp.float32, -scale, scale),
        "o_b": jax.random.uniform(kbo, (1, D), jnp.float32, -scale, scale),
    }

    ref = reference_mha(x, params, H)

    # f32 MXU path: tight structural check (only delta is the approx reciprocal)
    fwd_f32 = jax.jit(functools.partial(timed_poincare_mha, num_heads=H,
                                        compute_dtype=jnp.float32))
    out_f32 = fwd_f32(x, params)
    jax.block_until_ready(out_f32)
    assert out_f32.shape == (B, S, D)
    if not jnp.allclose(out_f32, ref, rtol=5e-3, atol=3e-4):
        raise AssertionError(
            f"f32 mismatch vs reference, max abs err = {jnp.max(jnp.abs(out_f32 - ref))}")

    # bf16 MXU path (production recommendation): mixed-precision tolerance
    fwd_bf16 = jax.jit(functools.partial(timed_poincare_mha, num_heads=H,
                                         compute_dtype=jnp.bfloat16))
    out_bf16 = fwd_bf16(x, params)
    jax.block_until_ready(out_bf16)
    assert out_bf16.shape == (B, S, D)
    if not jnp.allclose(out_bf16, ref, rtol=5e-2, atol=5e-3):
        raise AssertionError(
            f"bf16 mismatch vs reference, max abs err = {jnp.max(jnp.abs(out_bf16 - ref))}")

    print("KERNEL_OK")
</pallas_src>

<mosaic_0001>
module attributes {stable_mosaic.version = 11 : i64} {
  func.func @kernel(%arg0: i32, %arg1: memref<1x8x32xf32, #tpu.memory_space<vmem>>, %arg2: memref<32x96xf32, #tpu.memory_space<vmem>>, %arg3: memref<1x96xf32, #tpu.memory_space<vmem>>, %arg4: memref<32x32xf32, #tpu.memory_space<vmem>>, %arg5: memref<1x32xf32, #tpu.memory_space<vmem>>, %arg6: memref<1x8x32xf32, #tpu.memory_space<vmem>>, %arg7: memref<8x32xf32, #tpu.memory_space<vmem>>) attributes {dimension_semantics = [#tpu.dimension_semantics<parallel>], iteration_bounds = array<i64: 2>, scalar_prefetch = 0 : i64, scratch_operands = 1 : i64, tpu.core_type = #tpu.core_type<tc>, window_params = [{transform_indices = @transform_0, window_bounds = array<i64: 1, 8, 32>}, {pipeline_mode = #tpu.pipeline_mode<synchronous>, transform_indices = @transform_1, window_bounds = array<i64: 32, 96>}, {pipeline_mode = #tpu.pipeline_mode<synchronous>, transform_indices = @transform_2, window_bounds = array<i64: 1, 96>}, {pipeline_mode = #tpu.pipeline_mode<synchronous>, transform_indices = @transform_3, window_bounds = array<i64: 32, 32>}, {pipeline_mode = #tpu.pipeline_mode<synchronous>, transform_indices = @transform_4, window_bounds = array<i64: 1, 32>}, {transform_indices = @transform_5, window_bounds = array<i64: 1, 8, 32>}]} {
    %c0 = arith.constant 0 : index
    %c0_0 = arith.constant 0 : index
    %c0_1 = arith.constant 0 : index
    %0 = vector.load %arg1[%c0, %c0_0, %c0_1] : memref<1x8x32xf32, #tpu.memory_space<vmem>>, vector<1x8x32xf32>
    %1 = vector.shape_cast %0 : vector<1x8x32xf32> to vector<8x32xf32>
    %2 = arith.mulf %1, %1 : vector<8x32xf32>
    %cst = arith.constant dense<0.000000e+00> : vector<8xf32>
    %3 = vector.multi_reduction <add>, %2, %cst [1] : vector<8x32xf32> to vector<8xf32>
    %4 = vector.shape_cast %3 : vector<8xf32> to vector<8x1xf32>
    %cst_2 = arith.constant 1.000000e-24 : f32
    %5 = vector.broadcast %cst_2 : f32 to vector<8x1xf32>
    %6 = arith.maximumf %4, %5 : vector<8x1xf32>
    %7 = math.rsqrt %6 : vector<8x1xf32>
    %8 = arith.mulf %6, %7 : vector<8x1xf32>
    %cst_3 = arith.constant -0.999998986 : f32
    %cst_4 = arith.constant 0.999998986 : f32
    %9 = vector.broadcast %cst_3 : f32 to vector<8x1xf32>
    %10 = arith.maximumf %9, %8 : vector<8x1xf32>
    %11 = vector.broadcast %cst_4 : f32 to vector<8x1xf32>
    %12 = arith.minimumf %11, %10 : vector<8x1xf32>
    %cst_5 = arith.constant 1.000000e+00 : f32
    %13 = vector.broadcast %cst_5 : f32 to vector<8x1xf32>
    %14 = arith.addf %13, %12 : vector<8x1xf32>
    %cst_6 = arith.constant 1.000000e+00 : f32
    %15 = vector.broadcast %cst_6 : f32 to vector<8x1xf32>
    %16 = arith.subf %15, %12 : vector<8x1xf32>
    %17 = arith.divf %14, %16 : vector<8x1xf32>
    %18 = math.log %17 : vector<8x1xf32>
    %cst_7 = arith.constant 5.000000e-01 : f32
    %19 = vector.broadcast %cst_7 : f32 to vector<8x1xf32>
    %20 = arith.mulf %19, %18 : vector<8x1xf32>
    %21 = arith.mulf %20, %7 : vector<8x1xf32>
    %22 = vector.broadcast %21 : vector<8x1xf32> to vector<8x32xf32>
    %23 = arith.mulf %1, %22 : vector<8x32xf32>
    %c0_8 = arith.constant 0 : index
    %c0_9 = arith.constant 0 : index
    %24 = vector.load %arg2[%c0_8, %c0_9] : memref<32x96xf32, #tpu.memory_space<vmem>>, vector<32x96xf32>
    %cst_10 = arith.constant dense<0.000000e+00> : vector<8x96xf32>
    %25 = tpu.matmul %23, %24, %cst_10 {dimension_numbers = #tpu.dot_dimension_numbers<[1], [0], [0], [1], [0, 0, 1, 1], [], []>} : vector<8x32xf32>, vector<32x96xf32>, vector<8x96xf32> -> vector<8x96xf32>
    %c0_11 = arith.constant 0 : index
    %c0_12 = arith.constant 0 : index
    %26 = vector.load %arg3[%c0_11, %c0_12] : memref<1x96xf32, #tpu.memory_space<vmem>>, vector<1x96xf32>
    %27 = vector.broadcast %26 : vector<1x96xf32> to vector<8x96xf32>
    %28 = arith.addf %25, %27 : vector<8x96xf32>
    %29 = vector.extract_strided_slice %28 {offsets = [0, 0], sizes = [8, 8], strides = [1, 1]} : vector<8x96xf32> to vector<8x8xf32>
    %30 = vector.extract_strided_slice %28 {offsets = [0, 8], sizes = [8, 8], strides = [1, 1]} : vector<8x96xf32> to vector<8x8xf32>
    %31 = vector.extract_strided_slice %28 {offsets = [0, 16], sizes = [8, 8], strides = [1, 1]} : vector<8x96xf32> to vector<8x8xf32>
    %32 = vector.extract_strided_slice %28 {offsets = [0, 24], sizes = [8, 8], strides = [1, 1]} : vector<8x96xf32> to vector<8x8xf32>
    %33 = vector.shape_cast %29 : vector<8x8xf32> to vector<1x8x8xf32>
    %34 = vector.shape_cast %30 : vector<8x8xf32> to vector<1x8x8xf32>
    %35 = vector.shape_cast %31 : vector<8x8xf32> to vector<1x8x8xf32>
    %36 = vector.shape_cast %32 : vector<8x8xf32> to vector<1x8x8xf32>
    %37 = tpu.concatenate %33, %34, %35, %36 in 0 : vector<1x8x8xf32>, vector<1x8x8xf32>, vector<1x8x8xf32>, vector<1x8x8xf32> -> vector<4x8x8xf32>
    %38 = vector.extract_strided_slice %28 {offsets = [0, 32], sizes = [8, 8], strides = [1, 1]} : vector<8x96xf32> to vector<8x8xf32>
    %39 = vector.extract_strided_slice %28 {offsets = [0, 40], sizes = [8, 8], strides = [1, 1]} : vector<8x96xf32> to vector<8x8xf32>
    %40 = vector.extract_strided_slice %28 {offsets = [0, 48], sizes = [8, 8], strides = [1, 1]} : vector<8x96xf32> to vector<8x8xf32>
    %41 = vector.extract_strided_slice %28 {offsets = [0, 56], sizes = [8, 8], strides = [1, 1]} : vector<8x96xf32> to vector<8x8xf32>
    %42 = vector.shape_cast %38 : vector<8x8xf32> to vector<1x8x8xf32>
    %43 = vector.shape_cast %39 : vector<8x8xf32> to vector<1x8x8xf32>
    %44 = vector.shape_cast %40 : vector<8x8xf32> to vector<1x8x8xf32>
    %45 = vector.shape_cast %41 : vector<8x8xf32> to vector<1x8x8xf32>
    %46 = tpu.concatenate %42, %43, %44, %45 in 0 : vector<1x8x8xf32>, vector<1x8x8xf32>, vector<1x8x8xf32>, vector<1x8x8xf32> -> vector<4x8x8xf32>
    %47 = vector.extract_strided_slice %28 {offsets = [0, 64], sizes = [8, 8], strides = [1, 1]} : vector<8x96xf32> to vector<8x8xf32>
    %48 = vector.extract_strided_slice %28 {offsets = [0, 72], sizes = [8, 8], strides = [1, 1]} : vector<8x96xf32> to vector<8x8xf32>
    %49 = vector.extract_strided_slice %28 {offsets = [0, 80], sizes = [8, 8], strides = [1, 1]} : vector<8x96xf32> to vector<8x8xf32>
    %50 = vector.extract_strided_slice %28 {offsets = [0, 88], sizes = [8, 8], strides = [1, 1]} : vector<8x96xf32> to vector<8x8xf32>
    %51 = vector.shape_cast %47 : vector<8x8xf32> to vector<1x8x8xf32>
    %52 = vector.shape_cast %48 : vector<8x8xf32> to vector<1x8x8xf32>
    %53 = vector.shape_cast %49 : vector<8x8xf32> to vector<1x8x8xf32>
    %54 = vector.shape_cast %50 : vector<8x8xf32> to vector<1x8x8xf32>
    %55 = tpu.concatenate %51, %52, %53, %54 in 0 : vector<1x8x8xf32>, vector<1x8x8xf32>, vector<1x8x8xf32>, vector<1x8x8xf32> -> vector<4x8x8xf32>
    "tpu.trace_start"() <{level = 10 : i32, message = "hqd,hkd->hqk"}> : () -> ()
    %cst_13 = arith.constant dense<0.000000e+00> : vector<4x8x8xf32>
    %56 = tpu.matmul %37, %46, %cst_13 {dimension_numbers = #tpu.dot_dimension_numbers<[2], [2], [1], [1], [0, 0, 0, 1, 1, 1], [0], [0]>} : vector<4x8x8xf32>, vector<4x8x8xf32>, vector<4x8x8xf32> -> vector<4x8x8xf32>
    "tpu.trace_stop"() : () -> ()
    %cst_14 = arith.constant 1.481850e+00 : f32
    %57 = vector.broadcast %cst_14 : f32 to vector<4x8x8xf32>
    %58 = arith.mulf %56, %57 : vector<4x8x8xf32>
    %cst_15 = arith.constant dense<0xFF800000> : vector<4x8xf32>
    %59 = vector.multi_reduction <maximumf>, %58, %cst_15 [2] : vector<4x8x8xf32> to vector<4x8xf32>
    %60 = vector.shape_cast %59 : vector<4x8xf32> to vector<4x8x1xf32>
    %61 = vector.broadcast %60 : vector<4x8x1xf32> to vector<4x8x8xf32>
    %62 = arith.subf %58, %61 : vector<4x8x8xf32>
    %63 = math.exp %62 : vector<4x8x8xf32>
    %cst_16 = arith.constant dense<0.000000e+00> : vector<4x8xf32>
    %64 = vector.multi_reduction <add>, %63, %cst_16 [2] : vector<4x8x8xf32> to vector<4x8xf32>
    %65 = vector.shape_cast %64 : vector<4x8xf32> to vector<4x8x1xf32>
    %66 = tpu.reciprocal %65 {approx = true} : vector<4x8x1xf32> -> vector<4x8x1xf32>
    %67 = vector.broadcast %66 : vector<4x8x1xf32> to vector<4x8x8xf32>
    %68 = arith.mulf %63, %67 : vector<4x8x8xf32>
    "tpu.trace_start"() <{level = 10 : i32, message = "hqk,hkd->hqd"}> : () -> ()
    %cst_17 = arith.constant dense<0.000000e+00> : vector<4x8x8xf32>
    %69 = tpu.matmul %68, %55, %cst_17 {dimension_numbers = #tpu.dot_dimension_numbers<[2], [1], [1], [2], [0, 0, 0, 1, 1, 2], [0], [0]>} : vector<4x8x8xf32>, vector<4x8x8xf32>, vector<4x8x8xf32> -> vector<4x8x8xf32>
    "tpu.trace_stop"() : () -> ()
    %70 = vector.extract_strided_slice %69 {offsets = [0, 0, 0], sizes = [1, 8, 8], strides = [1, 1, 1]} : vector<4x8x8xf32> to vector<1x8x8xf32>
    %71 = vector.shape_cast %70 : vector<1x8x8xf32> to vector<8x8xf32>
    %c0_18 = arith.constant 0 : index
    %c0_19 = arith.constant 0 : index
    %72 = vector.load %arg7[%c0_18, %c0_19] : memref<8x32xf32, #tpu.memory_space<vmem>>, vector<8x8xf32>
    tpu.vector_store %arg7[%c0_18, %c0_19], %71 {strides = array<i32>} : memref<8x32xf32, #tpu.memory_space<vmem>>, vector<8x8xf32>,
    %73 = vector.extract_strided_slice %69 {offsets = [1, 0, 0], sizes = [1, 8, 8], strides = [1, 1, 1]} : vector<4x8x8xf32> to vector<1x8x8xf32>
    %74 = vector.shape_cast %73 : vector<1x8x8xf32> to vector<8x8xf32>
    %c0_20 = arith.constant 0 : index
    %c8 = arith.constant 8 : index
    %75 = vector.load %arg7[%c0_20, %c8] : memref<8x32xf32, #tpu.memory_space<vmem>>, vector<8x8xf32>
    tpu.vector_store %arg7[%c0_20, %c8], %74 {strides = array<i32>} : memref<8x32xf32, #tpu.memory_space<vmem>>, vector<8x8xf32>,
    %76 = vector.extract_strided_slice %69 {offsets = [2, 0, 0], sizes = [1, 8, 8], strides = [1, 1, 1]} : vector<4x8x8xf32> to vector<1x8x8xf32>
    %77 = vector.shape_cast %76 : vector<1x8x8xf32> to vector<8x8xf32>
    %c0_21 = arith.constant 0 : index
    %c16 = arith.constant 16 : index
    %78 = vector.load %arg7[%c0_21, %c16] : memref<8x32xf32, #tpu.memory_space<vmem>>, vector<8x8xf32>
    tpu.vector_store %arg7[%c0_21, %c16], %77 {strides = array<i32>} : memref<8x32xf32, #tpu.memory_space<vmem>>, vector<8x8xf32>,
    %79 = vector.extract_strided_slice %69 {offsets = [3, 0, 0], sizes = [1, 8, 8], strides = [1, 1, 1]} : vector<4x8x8xf32> to vector<1x8x8xf32>
    %80 = vector.shape_cast %79 : vector<1x8x8xf32> to vector<8x8xf32>
    %c0_22 = arith.constant 0 : index
    %c24 = arith.constant 24 : index
    %81 = vector.load %arg7[%c0_22, %c24] : memref<8x32xf32, #tpu.memory_space<vmem>>, vector<8x8xf32>
    tpu.vector_store %arg7[%c0_22, %c24], %80 {strides = array<i32>} : memref<8x32xf32, #tpu.memory_space<vmem>>, vector<8x8xf32>,
    %c0_23 = arith.constant 0 : index
    %c0_24 = arith.constant 0 : index
    %82 = vector.load %arg7[%c0_23, %c0_24] : memref<8x32xf32, #tpu.memory_space<vmem>>, vector<8x32xf32>
    %c0_25 = arith.constant 0 : index
    %c0_26 = arith.constant 0 : index
    %83 = vector.load %arg4[%c0_25, %c0_26] : memref<32x32xf32, #tpu.memory_space<vmem>>, vector<32x32xf32>
    %cst_27 = arith.constant dense<0.000000e+00> : vector<8x32xf32>
    %84 = tpu.matmul %82, %83, %cst_27 {dimension_numbers = #tpu.dot_dimension_numbers<[1], [0], [0], [1], [0, 0, 1, 1], [], []>} : vector<8x32xf32>, vector<32x32xf32>, vector<8x32xf32> -> vector<8x32xf32>
    %c0_28 = arith.constant 0 : index
    %c0_29 = arith.constant 0 : index
    %85 = vector.load %arg5[%c0_28, %c0_29] : memref<1x32xf32, #tpu.memory_space<vmem>>, vector<1x32xf32>
    %86 = vector.broadcast %85 : vector<1x32xf32> to vector<8x32xf32>
    %87 = arith.addf %84, %86 : vector<8x32xf32>
    %88 = arith.mulf %87, %87 : vector<8x32xf32>
    %cst_30 = arith.constant dense<0.000000e+00> : vector<8xf32>
    %89 = vector.multi_reduction <add>, %88, %cst_30 [1] : vector<8x32xf32> to vector<8xf32>
    %90 = vector.shape_cast %89 : vector<8xf32> to vector<8x1xf32>
    %cst_31 = arith.constant 1.000000e-24 : f32
    %91 = vector.broadcast %cst_31 : f32 to vector<8x1xf32>
    %92 = arith.maximumf %90, %91 : vector<8x1xf32>
    %93 = math.rsqrt %92 : vector<8x1xf32>
    %94 = arith.mulf %92, %93 : vector<8x1xf32>
    %95 = math.tanh %94 : vector<8x1xf32>
    %96 = arith.mulf %95, %93 : vector<8x1xf32>
    %97 = vector.broadcast %96 : vector<8x1xf32> to vector<8x32xf32>
    %98 = arith.mulf %87, %97 : vector<8x32xf32>
    %c0_32 = arith.constant 0 : index
    %c0_33 = arith.constant 0 : index
    %c0_34 = arith.constant 0 : index
    %99 = vector.load %arg6[%c0_32, %c0_33, %c0_34] : memref<1x8x32xf32, #tpu.memory_space<vmem>>, vector<1x8x32xf32>
    %100 = vector.shape_cast %99 : vector<1x8x32xf32> to vector<8x32xf32>
    %101 = vector.shape_cast %98 : vector<8x32xf32> to vector<1x8x32xf32>
    tpu.vector_store %arg6[%c0_32, %c0_33, %c0_34], %101 {strides = array<i32>} : memref<1x8x32xf32, #tpu.memory_space<vmem>>, vector<1x8x32xf32>,
    return
  }
  func.func @transform_0(%arg0: i32) -> (i32, i32, i32) {
    %c0_i32 = arith.constant 0 : i32
    %c0_i32_0 = arith.constant 0 : i32
    %c0_i32_1 = arith.constant 0 : i32
    return %arg0, %c0_i32, %c0_i32_0 : i32, i32, i32
  }
  func.func @transform_1(%arg0: i32) -> (i32, i32) {
    %c0_i32 = arith.constant 0 : i32
    %c0_i32_0 = arith.constant 0 : i32
    %c0_i32_1 = arith.constant 0 : i32
    return %c0_i32, %c0_i32_0 : i32, i32
  }
  func.func @transform_2(%arg0: i32) -> (i32, i32) {
    %c0_i32 = arith.constant 0 : i32
    %c0_i32_0 = arith.constant 0 : i32
    %c0_i32_1 = arith.constant 0 : i32
    return %c0_i32, %c0_i32_0 : i32, i32
  }
  func.func @transform_3(%arg0: i32) -> (i32, i32) {
    %c0_i32 = arith.constant 0 : i32
    %c0_i32_0 = arith.constant 0 : i32
    %c0_i32_1 = arith.constant 0 : i32
    return %c0_i32, %c0_i32_0 : i32, i32
  }
  func.func @transform_4(%arg0: i32) -> (i32, i32) {
    %c0_i32 = arith.constant 0 : i32
    %c0_i32_0 = arith.constant 0 : i32
    %c0_i32_1 = arith.constant 0 : i32
    return %c0_i32, %c0_i32_0 : i32, i32
  }
  func.func @transform_5(%arg0: i32) -> (i32, i32, i32) {
    %c0_i32 = arith.constant 0 : i32
    %c0_i32_0 = arith.constant 0 : i32
    %c0_i32_1 = arith.constant 0 : i32
    return %arg0, %c0_i32, %c0_i32_0 : i32, i32, i32
  }
}

</mosaic_0001>

<bundles_post_ra>
// kernel: timed_poincare_mha.1
= control target key start
LH: loop header
LB: loop body
LE: loop exit
PB: predicated region body
PF: predicated region fallthrough
CT: control target
= control target key end

     0   :  { %10 = vsyncpa [#allocation4], 0  ;;  %s1687_s0 = inlined_call_operand.vmem [shape: f32[2,8,32], index: 0, kind: input, shape index: {}]   ;;  %s1688_s1 = inlined_call_operand.vmem [shape: f32[32,96], index: 1, kind: input, shape index: {}]   ;;  %s1689_s2 = inlined_call_operand.vmem [shape: f32[1,96], index: 2, kind: input, shape index: {}]   ;;  %s1690_s3 = inlined_call_operand.vmem [shape: f32[32,32], index: 3, kind: input, shape index: {}]   ;;  %s1691_s4 = inlined_call_operand.vmem [shape: f32[1,32], index: 4, kind: input, shape index: {}]   ;;  %s1692_s5 = inlined_call_operand.hbm [shape: f32[2,8,32], index: 5, kind: output, shape index: {}]  }
   0x1   :  { %12 = vsyncpa [#allocation4 + $0x1], 0  ;;  %s1485_s18 = smov 0   ;;  %s1487_s19 = smov 0  }
   0x2   :  { %s1489_s20 = smov 0   ;;  %s1491_s21 = smov 0  }
   0x3 LB: > { %s1506_s22 = sadd.s32 4294967295, %s1441_s21   ;;  %s1176_s23 = sadd.s32 4294967294, %s1441_s21   ;;  %s1441_s21 = sphi %s1491_s21, %s1698_s21   ;;  %s1437_s20 = sphi %s1489_s20, %s1697_s20   ;;  %s1433_s19 = sphi %s1487_s19, %s1696_s19   ;;  %s1429_s18 = sphi %s1485_s18, %s1695_s18  }
   0x4   : > { %s1510_s24 = sadd.s32 1, %s1441_s21   ;;  %s135_s25 = sadd.s32 1, %s1437_s20 }
   0x5   : > { %s132_s26 = ssub.s32 %s1441_s21, %s1510_s24  ;;  %p145_p0 = scmp.ne.s32.totalorder %s1437_s20, %s1433_s19 }
   0x6   : > { %p133_p1 = scmp.eq.s32.totalorder %s132_s26, 0  ;;  %p146_p2 = scmp.eq.s32.totalorder %s1506_s22, 1 }
   0x7   : > { %p151_p3 = scmp.ne.s32.totalorder %s1433_s19, %s1429_s18  ;;  %p152_p4 = scmp.eq.s32.totalorder %s1176_s23, 1 }
   0x8   : > { %s1521_s27 = scalar_select %p133_p1, %s1437_s20, %s135_s25  }
   0x9   : > { %p1523_p5 = por %p146_p2, %p145_p0  ;;  %p1527_p6 = por %p152_p4, %p151_p3 }
   0xa   : > { %p1179_p7 = scmp.ge.s32.totalorder %s1441_s21, 1  ;;  %p189_p8 = scmp.lt.s32.totalorder %s1441_s21, 3 }
   0xc   : > { %p190_p9 = pnand %p1179_p7, %p189_p8 }
   0xd   : > { %p216_p10 = scmp.lt.s32.totalorder (!%p190_p9), %s1506_s22, 1  ;;  %vm222_vm0 = vcmask (!%p190_p9), 261120   ;;  %v240_v3 = vld [vmem:[%s1688_s1] sm:$0xff] (!%p190_p9)  ;;  %v241_v4 = vld [vmem:[%s1688_s1 + $0x8] sm:$0xff] (!%p190_p9)  ;;  %v1443_v6 = vmov (!%p190_p9), 0.0|0.0   ;;  %v242_v7 = vld [vmem:[%s1688_s1 + $0x10] sm:$0xff] (!%p190_p9) }
   0xe   : > { %193 = sbr.rel (%p190_p9) target bundleno = 1943 (0x797), region = 40  ;;  %v1292_v5 = vpack.c.bf16 (!%p190_p9), %v241_v4, %v240_v3  ;;  %1291 = vmatprep.subr.bf16.mxu0 (!%p190_p9), %v1443_v6  ;;  %v243_v8 = vld [vmem:[%s1688_s1 + $0x18] sm:$0xff] (!%p190_p9)  ;;  %vm1444_vm1 = vmmov (!%p190_p9), 0   ;;  %v1445_v10 = vmov (!%p190_p9), 0.0   ;;  %v1183_v25 = vld [vmem:[%s1689_s2] ss:$0 sm:$0xff] (!%p190_p9) }
   0xf   : > { %v1295_v9 = vpack.c.bf16 (!%p190_p9), %v243_v8, %v242_v7  ;;  %1237 = vmatprep.mubr.msk.f32.mxu0 (!%p190_p9), %vm1444_vm1, %v1445_v10  ;;  %1240 = vmatprep.subr.mxu1 (!%p190_p9), %v1445_v10  ;;  %s1446_s26 = smov (!%p190_p9), 112   ;;  %s1449_s7 = smov (!%p190_p9), 96   ;;  %vm333_vm2 = vcmask (!%p190_p9), 64512   ;;  %vm993_vm3 = vcmask (!%p190_p9), 130112   ;;  %vm999_vm4 = vcmask (!%p190_p9), 195712  }
  0x10   : > { %1293 = vmatpush3.bf16.msra.mxu0 (!%p190_p9), %v1292_v5  ;;  %1242 = vmatprep.mubr.msk.f32.mxu1 (!%p190_p9), %vm1444_vm1, %v1445_v10  ;;  %s1450_s8 = smov (!%p190_p9), 64   ;;  %s1451_s17 = smov (!%p190_p9), 8   ;;  %vm1005_vm5 = vcmask (!%p190_p9), 261312  }
  0x11   : > { %1294 = vmatprep.subr.bf16.mxu0 (!%p190_p9), %v1443_v6  ;;  %s1452_s23 = smov (!%p190_p9), 16   ;;  %s1453_s25 = smov (!%p190_p9), 24  }
  0x14   : > { %1296 = vmatpush3.bf16.msra.mxu0 (!%p190_p9), %v1295_v9 }
  0x15   : > { %s217_s30 = scalar_select %p216_p10, %s1506_s22, 1  ;;  %1260 = vmatprep.subr.mxu0 %v1445_v10 }
  0x17   : > { %s1181_s6 = sshll.u32 %s217_s30, 3  ;;  %s1447_s30 = smov 120  }
  0x18   : > { %s219_s9 = scalar_lea.vmem %s1687_s0, %s1181_s6  ;;  %s1448_s6 = smov 104  }
  0x19   : > { %v220_v0 = vld [vmem:[%s219_s9] sm:$0xff] }
  0x1a   : > { %v221_v1 = vmul.f32 %v220_v0, %v220_v0 }
  0x1c   : > { %v223_v2 = vsel %vm222_vm0, %v221_v1, 0.0 }
  0x1d   : > { %224 = vadd.xlane.f32.xlu0 %v223_v2 }
  0xaa   : > { %v225_v11 = vpop.xlane.xlu0 %224 }
  0xab   : > { %v226_v12 = vmax.f32 %v225_v11, 1e-24 }
  0xad   : > { %1353 = vrsqrt.f32 %v226_v12 }
  0xb7   : > { %v1354_v13 = vpop.eup %1353 }
  0xb8   : > { %v228_v14 = vmul.f32 %v1354_v13, %v226_v12 }
  0xba   : > { %v1182_v15 = vclamps-f32 %v228_v14, 0.999999 }
  0xbc   : > { %v232_v16 = vsub.f32 1.0, %v1182_v15  ;;  %v231_v17 = vadd.f32 1.0, %v1182_v15 }
  0xbe   : > { %1355 = vrcp.f32 %v232_v16 }
  0xc8   : > { %v1356_v18 = vpop.eup %1355 }
  0xc9   : > { %v234_v19 = vmul.f32 %v1356_v18, %v231_v17 }
  0xcb   : > { %1357 = vlog2.f32 %v234_v19 }
  0xd5   : > { %v1358_v20 = vpop.eup %1357 }
  0xd6   : > { %v236_v21 = vmul.f32 0.6931472, %v1358_v20 }
  0xd8   : > { %v237_v22 = vmul.f32 0.5, %v236_v21 }
  0xda   : > { %v238_v23 = vmul.f32 %v1354_v13, %v237_v22 }
  0xdc   : > { %v239_v24 = vmul.f32 %v238_v23, %v220_v0 }
  0xde   : > { %1238 = vmatmul.mubr.msk.f32.vlgmr.msra.gmra.mrb[0].mxu0 %vm222_vm0, %v239_v24 }
  0xdf   : > { %1262 = vmatprep.mubr.msk.f32.mxu0 %vm1444_vm1, %v1445_v10 }
 0x1b1   : > { %v320_v26 = vpop.f32.mrb[0].mxu0 }
 0x1b2   : > { %v321_v27 = vadd.f32 %v1183_v25, %v320_v26  ;;  %v1239_v28 = vpop.f32.mrb[1].mxu0 }
 0x1b3   : > { %v1008_v28 = vld [vmem:[%s1690_s3] sm:$0xff] }
 0x1b4   : > { %327 = vrot.lane.b32.xlu1 %v321_v27, %s1446_s26  ;;  %325 = vrot.lane.b32.xlu0 %v321_v27, %s1447_s30 }
 0x1b8   : > { %329 = vrot.lane.b32.xlu1 %v321_v27, %s1448_s6  ;;  %s213_s6 = sand.u32 1, %s1433_s19  }
 0x1b9   : > { %s1104_s14 = scalar_lea.sflag [#allocation4], %s213_s6 }
 0x1bc   : > { %331 = vrot.lane.b32.xlu1 %v321_v27, %s1449_s7 }
 0x226   : > { %v1565_v29 = vpop.permute.xlu1 %327  ;;  %v326_v30 = vpop.permute.xlu0 %325 }
 0x227   : > { %408 = vrot.lane.b32.xlu1 %v326_v30, %s1449_s7 }
 0x22a   : > { %v1567_v31 = vpop.permute.xlu1 %329 }
 0x22b   : > { %484 = vrot.lane.b32.xlu1 %v1565_v29, %s1449_s7 }
 0x22e   : > { %v332_v32 = vpop.permute.xlu1 %331 }
 0x22f   : > { %1241 = vmatpush3.xpose.msk.msra.mxu1 %vm333_vm2, %v332_v32  ;;  %560 = vrot.lane.b32.xlu1 %v1567_v31, %s1449_s7  ;;  %s1180_s7 = sshll.u32 %s213_s6, 3 }
 0x230   : > { %1245 = vmatprep.subr.mxu1 %v1445_v10  ;;  %s215_s9 = scalar_lea.vmem [#allocation3], %s1180_s7 }
 0x231   : > { %s1117_s10 = sshll.u32 %s215_s9, 4  ;;  %s1646_s10 = int_to_ptr.vmem [resolvable:$true] %s1117_s10 }
 0x232   : > { %1243 = vmatmul.mubr.msk.f32.vlgmr.msra.gmra.mrb[0].mxu1 %vm333_vm2, %v321_v27  ;;  %s1379_s15 = scalar_lea.vmem %s1646_s10, 128 }
 0x233   : > { %1247 = vmatprep.mubr.msk.f32.mxu1 %vm1444_vm1, %v1445_v10  ;;  %p1380_p11 = scmp.ne.s32.totalorder %s1646_s10, %s1379_s15 }
 0x235   : > { %p1381_p12 = pnand %p1380_p11, %p1523_p5 }
 0x237   : > { %p1382_p13 = pneg %p1381_p12 }
 0x299   : > { %v409_v33 = vpop.permute.xlu1 %408 }
 0x29a   : > { %1246 = vmatpush3.xpose.msk.msra.mxu1 %vm333_vm2, %v409_v33 }
 0x29b   : > { %1250 = vmatprep.subr.mxu1 %v1445_v10 }
 0x29d   : > { %1248 = vmatmul.mubr.msk.f32.vlgmr.msra.gmra.mrb[2].mxu1 %vm333_vm2, %v326_v30  ;;  %v485_v34 = vpop.permute.xlu1 %484 }
 0x29e   : > { %1251 = vmatpush3.xpose.msk.msra.mxu1 %vm333_vm2, %v485_v34  ;;  %1252 = vmatprep.mubr.msk.f32.mxu1 %vm1444_vm1, %v1445_v10 }
 0x29f   : > { %1255 = vmatprep.subr.mxu1 %v1445_v10 }
 0x2a1   : > { %1253 = vmatmul.mubr.msk.f32.vlgmr.msra.gmra.mrb[4].mxu1 %vm333_vm2, %v1565_v29  ;;  %v561_v35 = vpop.permute.xlu1 %560 }
 0x2a2   : > { %1256 = vmatpush3.xpose.msk.msra.mxu1 %vm333_vm2, %v561_v35  ;;  %1257 = vmatprep.mubr.msk.f32.mxu1 %vm1444_vm1, %v1445_v10 }
 0x2a3   : > { %1265 = vmatprep.subr.mxu1 %v1445_v10 }
 0x2a5   : > { %1258 = vmatmul.mubr.msk.f32.vlgmr.msra.gmra.mrb[6].mxu1 %vm333_vm2, %v1567_v31 }
 0x2a6   : > { %1267 = vmatprep.mubr.msk.f32.mxu1 %vm1444_vm1, %v1445_v10 }
 0x305   : > { %v404_v36 = vpop.f32.mrb[0].mxu1 }
 0x306   : > { %v636_v37 = vmul.f32 1.48185, %v404_v36  ;;  %v1244_v38 = vpop.f32.mrb[1].mxu1 }
 0x308   : > { %v640_v39 = vsel %vm333_vm2, %v636_v37, -inf }
 0x309   : > { %641 = vmax.xlane.f32.xlu1 %v640_v39 }
 0x370   : > { %v480_v40 = vpop.f32.mrb[2].mxu1 }
 0x371   : > { %v637_v41 = vmul.f32 1.48185, %v480_v40  ;;  %v1249_v42 = vpop.f32.mrb[3].mxu1 }
 0x372   : > { %v1197_v42 = vld [vmem:[%s1691_s4] ss:$0 sm:$0xff] }
 0x373   : > { %v643_v43 = vsel %vm333_vm2, %v637_v41, -inf }
 0x374   : > { %644 = vmax.xlane.f32.xlu0 %v643_v43  ;;  %v556_v44 = vpop.f32.mrb[4].mxu1 }
 0x375   : > { %v638_v45 = vmul.f32 1.48185, %v556_v44  ;;  %v1254_v46 = vpop.f32.mrb[5].mxu1 }
 0x377   : > { %v646_v47 = vsel %vm333_vm2, %v638_v45, -inf }
 0x378   : > { %647 = vmax.xlane.f32.xlu0 %v646_v47  ;;  %v632_v48 = vpop.f32.mrb[6].mxu1 }
 0x379   : > { %v639_v49 = vmul.f32 1.48185, %v632_v48  ;;  %v1259_v50 = vpop.f32.mrb[7].mxu1 }
 0x37b   : > { %v649_v51 = vsel %vm333_vm2, %v639_v49, -inf }
 0x37c   : > { %650 = vmax.xlane.f32.xlu1 %v649_v51 }
 0x38d   : > { %760 = vrot.lane.b32.xlu1 %v326_v30, %s1450_s8 }
 0x38e   : > { %684 = vrot.lane.b32.xlu0 %v321_v27, %s1450_s8 }
 0x396   : > { %v642_v52 = vpop.xlane.xlu1 %641 }
 0x397   : > { %v652_v53 = vsub.f32 %v636_v37, %v642_v52 }
 0x399   : > { %v656_v54 = vmul.f32 1.442695, %v652_v53 }
 0x39b   : > { %1359 = vpow2.f32 %v656_v54 }
 0x3a5   : > { %v1360_v55 = vpop.eup %1359 }
 0x3a6   : > { %v664_v56 = vsel %vm333_vm2, %v1360_v55, 0.0 }
 0x3ad   : > { %665 = vadd.xlane.f32.xlu0 %v664_v56 }
 0x401   : > { %v645_v57 = vpop.xlane.xlu0 %644 }
 0x402   : > { %v653_v58 = vsub.f32 %v637_v41, %v645_v57 }
 0x404   : > { %v658_v59 = vmul.f32 1.442695, %v653_v58 }
 0x405   : > { %v648_v60 = vpop.xlane.xlu0 %647 }
 0x406   : > { %1361 = vpow2.f32 %v658_v59  ;;  %v654_v61 = vsub.f32 %v638_v45, %v648_v60 }
 0x408   : > { %v660_v62 = vmul.f32 1.442695, %v654_v61 }
 0x409   : > { %v685_v63 = vpop.permute.xlu0 %684  ;;  %v651_v0 = vpop.xlane.xlu1 %650 }
 0x40a   : > { %1363 = vpow2.f32 %v660_v62  ;;  %v655_v1 = vsub.f32 %v639_v49, %v651_v0  ;;  %1261 = vmatpush3.msra.mxu0 %v685_v63 }
 0x40b   : > { %1270 = vmatprep.subr.mxu0 %v1445_v10 }
 0x40c   : > { %v662_v2 = vmul.f32 1.442695, %v655_v1 }
 0x40d   : > { %v761_v3 = vpop.permute.xlu1 %760 }
 0x40e   : > { %1365 = vpow2.f32 %v662_v2  ;;  %1266 = vmatpush3.msra.mxu1 %v761_v3 }
 0x40f   : > { %1275 = vmatprep.subr.mxu1 %v1445_v10 }
 0x410   : > { %v1362_v4 = vpop.eup %1361 }
 0x411   : > { %v667_v5 = vsel %vm333_vm2, %v1362_v4, 0.0 }
 0x412   : > { %668 = vadd.xlane.f32.xlu1 %v667_v5 }
 0x414   : > { %v1364_v7 = vpop.eup %1363 }
 0x415   : > { %v670_v8 = vsel %vm333_vm2, %v1364_v7, 0.0 }
 0x416   : > { %671 = vadd.xlane.f32.xlu0 %v670_v8 }
 0x418   : > { %v1366_v9 = vpop.eup %1365 }
 0x419   : > { %v673_v11 = vsel %vm333_vm2, %v1366_v9, 0.0 }
 0x41a   : > { %674 = vadd.xlane.f32.xlu1 %v673_v11 }
 0x42b   : > { %836 = vrot.lane.b32.xlu1 %v1565_v29, %s1450_s8  ;;  %v1009_v29 = vld [vmem:[%s1690_s3 + $0x8] sm:$0xff] }
 0x42c   : > { %912 = vrot.lane.b32.xlu0 %v1567_v31, %s1450_s8  ;;  %v1298_v30 = vpack.c.bf16 %v1009_v29, %v1008_v28  ;;  %v1011_v31 = vld [vmem:[%s1690_s3 + $0x18] sm:$0xff]  ;;  %s1200_s8 = sshll.u32 %s1506_s22, 7  ;;  %s1454_s22 = smov [#allocation3]  }
 0x42d   : > { %s1644_s13 = scalar_lea.hbm %s1692_s5, %s1200_s8  ;;  %s1383_s16 = sshll.u32 %s1454_s22, 4  ;;  %s1384_s16 = int_to_ptr.vmem [resolvable:$false] %s1383_s16 }
 0x42e   : > { %p1386_p0 = scmp.lt.s32.totalorder %s1646_s10, %s1384_s16 }
 0x43a   : > { %v666_v12 = vpop.xlane.xlu0 %665 }
 0x43b   : > { %1367 = vrcp.f32 %v666_v12 }
 0x445   : > { %v1368_v13 = vpop.eup %1367 }
 0x446   : > { %v680_v14 = vmul.f32 %v1368_v13, %v1360_v55 }
 0x448   : > { %1263 = vmatmul.mubr.msk.f32.vlgmr.msra.gmra.mrb[2].mxu0 %vm333_vm2, %v680_v14 }
 0x449   : > { %1272 = vmatprep.mubr.msk.f32.mxu0 %vm1444_vm1, %v1445_v10 }
 0x49f   : > { %v669_v15 = vpop.xlane.xlu1 %668 }
 0x4a0   : > { %1369 = vrcp.f32 %v669_v15 }
 0x4a3   : > { %v672_v16 = vpop.xlane.xlu0 %671 }
 0x4a4   : > { %1371 = vrcp.f32 %v672_v16 }
 0x4a7   : > { %v675_v17 = vpop.xlane.xlu1 %674  ;;  %v913_v21 = vpop.permute.xlu0 %912 }
 0x4a8   : > { %1373 = vrcp.f32 %v675_v17 }
 0x4aa   : > { %v1370_v18 = vpop.eup %1369 }
 0x4ab   : > { %v681_v19 = vmul.f32 %v1370_v18, %v1362_v4  ;;  %v837_v20 = vpop.permute.xlu1 %836 }
 0x4ac   : > { %1271 = vmatpush3.msra.mxu0 %v837_v20 }
 0x4ad   : > { %1268 = vmatmul.mubr.msk.f32.vlgmr.msra.gmra.mrb[8].mxu1 %vm333_vm2, %v681_v19  ;;  %1297 = vmatprep.subr.bf16.mxu0 %v1443_v6 }
 0x4ae   : > { %v1372_v22 = vpop.eup %1371  ;;  %1276 = vmatpush3.msra.mxu1 %v913_v21  ;;  %1277 = vmatprep.mubr.msk.f32.mxu1 %vm1444_vm1, %v1445_v10 }
 0x4af   : > { %v682_v23 = vmul.f32 %v1372_v22, %v1364_v7 }
 0x4b1   : > { %1273 = vmatmul.mubr.msk.f32.vlgmr.msra.gmra.mrb[4].mxu0 %vm333_vm2, %v682_v23 }
 0x4b2   : > { %v1374_v24 = vpop.eup %1373  ;;  %1288 = vmatprep.mubr.msk.f32.mxu0 %vm1444_vm1, %v1445_v10  ;;  %v1010_v10 = vld [vmem:[%s1690_s3 + $0x10] sm:$0xff]  ;;  %1299 = vmatpush3.bf16.msra.mxu0 %v1298_v30 }
 0x4b3   : > { %v683_v25 = vmul.f32 %v1374_v24, %v1366_v9  ;;  %v1301_v32 = vpack.c.bf16 %v1011_v31, %v1010_v10  ;;  %1300 = vmatprep.subr.bf16.mxu0 %v1443_v6 }
 0x4b5   : > { %1278 = vmatmul.mubr.msk.f32.vlgmr.msra.gmra.mrb[10].mxu1 %vm333_vm2, %v683_v25 }
 0x4b6   : > { %1302 = vmatpush3.bf16.msra.mxu0 %v1301_v32 }
 0x51b   : > { %v756_v26 = vpop.f32.mrb[2].mxu0 }
 0x51c   : > { %988 = vst.msk [vmem:[#allocation2] sm:$0xff] %vm333_vm2, %v756_v26  ;;  %v1264_v27 = vpop.f32.mrb[3].mxu0 }
 0x580   : > { %v832_v33 = vpop.f32.mrb[8].mxu1 }
 0x581   : > { %990 = vrot.lane.b32.xlu1 %v832_v33, %s1451_s17  ;;  %v1269_v34 = vpop.f32.mrb[9].mxu1  ;;  %s1385_s17 = scalar_lea.vmem %s1384_s16, 256 }
 0x582   : > { %p1387_p1 = scmp.lt.s32.totalorder %s1385_s17, %s1379_s15 }
 0x584   : > { %v908_v35 = vpop.f32.mrb[4].mxu0  ;;  %p1388_p2 = por %p1387_p1, %p1386_p0 }
 0x585   : > { %996 = vrot.lane.b32.xlu0 %v908_v35, %s1452_s23  ;;  %v1274_v36 = vpop.f32.mrb[5].mxu0 }
 0x586   : > { %p1389_p3 = pnand %p1388_p2, %p1382_p13 }
 0x588   : > { %v984_v37 = vpop.f32.mrb[10].mxu1 }
 0x589   : > { %1002 = vrot.lane.b32.xlu1 %v984_v37, %s1453_s25  ;;  %v1279_v38 = vpop.f32.mrb[11].mxu1 }
 0x5f3   : > { %v991_v39 = vpop.permute.xlu1 %990 }
 0x5f4   : > { %994 = vst.msk [vmem:[#allocation2] sm:$0xff] %vm993_vm3, %v991_v39 }
 0x5f7   : > { %v997_v40 = vpop.permute.xlu0 %996 }
 0x5f8   : > { %1000 = vst.msk [vmem:[#allocation2] sm:$0xff] %vm999_vm4, %v997_v40 }
 0x5fb   : > { %v1003_v6 = vpop.permute.xlu1 %1002 }
 0x5fc   : > { %1006 = vst.msk [vmem:[#allocation2] sm:$0xff] %vm1005_vm5, %v1003_v6 }
 0x603   : > { %v1007_v41 = vld [vmem:[#allocation2] sm:$0xff] }
 0x604   : > { %1289 = vmatmul.mubr.msk.f32.vlgmr.msra.gmra.mrb[6].mxu0 %vm222_vm0, %v1007_v41 }
 0x6d7   : > { %v1088_v43 = vpop.f32.mrb[6].mxu0 }
 0x6d8   : > { %v1089_v44 = vadd.f32 %v1197_v42, %v1088_v43  ;;  %v1290_v45 = vpop.f32.mrb[7].mxu0 }
 0x6da   : > { %v1092_v46 = vmul.f32 %v1089_v44, %v1089_v44 }
 0x6dc   : > { %v1093_v47 = vsel %vm222_vm0, %v1092_v46, 0.0 }
 0x6dd   : > { %1094 = vadd.xlane.f32.xlu0 %v1093_v47 }
 0x76a   : > { %v1095_v48 = vpop.xlane.xlu0 %1094 }
 0x76b   : > { %v1096_v49 = vmax.f32 %v1095_v48, 1e-24 }
 0x76d   : > { %1375 = vrsqrt.f32 %v1096_v49 }
 0x777   : > { %v1376_v50 = vpop.eup %1375 }
 0x778   : > { %v1098_v51 = vmul.f32 %v1376_v50, %v1096_v49 }
 0x77a   : > { %1377 = vtanh.f32 %v1098_v51 }
 0x784   : > { %v1378_v52 = vpop.eup %1377 }
 0x785   : > { %v1100_v53 = vmul.f32 %v1378_v52, %v1376_v50 }
 0x787   : > { %v1101_v54 = vmul.f32 %v1100_v53, %v1089_v44 }
 0x789   : > { %1102 = vst.msk [vmem:[%s215_s9] sm:$0xff] %vm222_vm0, %v1101_v54 }
 0x78a   : > { %1392 = shalt.err (!%p1389_p3)
}
 0x78b   : > { %s1393_s23 = scalar_lea.hbm %s1644_s13, 128  ;;  %s1397_s30 = scalar_lea.hbm %s1692_s5, 256 }
 0x78c   : > { %p1394_p4 = scmp.ne.s32.totalorder %s1644_s13, %s1393_s23  ;;  %p1398_p9 = scmp.lt.u32.totalorder %s1644_s13, %s1692_s5 }
 0x78d   : > { %p1399_p10 = scmp.lt.u32.totalorder %s1397_s30, %s1393_s23  ;;  %p1401_p12 = scmp.lt.u32.totalorder %s1393_s23, %s1644_s13 }
 0x78e   : > { %p1395_p7 = pnand %p1394_p4, %p1523_p5 }
 0x78f   : > { %p1400_p11 = por %p1399_p10, %p1398_p9 }
 0x790   : > { %p1396_p8 = pneg %p1395_p7 }
 0x791   : > { %p1402_p13 = por %p1401_p12, %p1400_p11 }
 0x793   : > { %p1403_p0 = pnand %p1402_p13, %p1396_p8 }
 0x795   : > { %1406 = shalt.err (!%p1403_p0)
}
 0x796   : > { %1303 = dma.vmem_to_hbm [thread:$0]  (%p1523_p5), %s1646_s10, 128, %s1644_s13, %s1104_s14  }
 0x797 PF: > { %p1309_p1 = scmp.ge.s32.totalorder %s1441_s21, 2  ;;  %s1129_s8 = sand.u32 1, %s1429_s18  }
 0x798   : > { %s1130_s9 = scalar_lea.sflag [#allocation4], %s1129_s8 }
 0x799   : > { %p1306_p2 = pnand %p1309_p1, %p1527_p6 }
 0x79b   : > { %1424 = dma.done.wait (!%p1306_p2), %s1130_s9, 128  }
 0x79c   : > { %1426 = vsyncadd (!%p1306_p2), %s1130_s9, 4294967168  ;;  %p15_p3 = scmp.ge.s32.totalorder %s1510_s24, 4   ;;  %s1695_s18 = smov %s1433_s19 }
 0x79d   : > { %s1696_s19 = smov %s1437_s20  ;;  %s1697_s20 = smov %s1521_s27 }
 0x79e   : > { %s1698_s21 = smov %s1510_s24  ;;  %17 = sbr.rel (!%p15_p3) target bundleno = 3 (0x3), region = 75 }
 0x7a5   :  { %1135 = vsyncpa [#allocation4], 1 }
 0x7a6   :  { %1137 = vsyncpa [#allocation4 + $0x1], 1 }

</bundles_post_ra>
